<compile_context>
chip_gen: v7x
topology: tpu7x:2x2x1
jax: 0.10.0
libtpu: 0.0.40
codegen_flags: <defaults>
</compile_context>

<pallas_src>
import functools

import jax
import jax.numpy as jnp
from jax.experimental import pallas as pl
from jax.experimental.pallas import tpu as pltpu


def _mlp_kernel(x_ref, w1_ref, b1_ref, w2_ref, b2_ref, o_ref):
    # x_ref : (C, TILE_N)     w1_ref: (hid, C)   b1_ref: (hid, 1)
    # w2_ref: (C, hid)        b2_ref: (C, 1)     o_ref : (C, TILE_N)
    x = x_ref[...]
    h = jnp.dot(w1_ref[...], x, preferred_element_type=jnp.float32)
    h = jnp.maximum(h + b1_ref[...], 0.0)                      # ReLU
    y = jnp.dot(w2_ref[...], h.astype(w2_ref.dtype),
                preferred_element_type=jnp.float32)
    y = jnp.maximum(y + b2_ref[...], 0.0)                      # ReLU
    o_ref[...] = y.astype(o_ref.dtype)


def _choose_tile_n(hw, target=2048):
    """Pick a lane-dense spatial tile.

    Preference order:
      1) largest multiple of 128 that divides hw (<= target)  -> no masking
      2) hw itself if hw < 128 (full last dim is always legal)
      3) a multiple of 128 <= target, last block masked via cdiv grid
    """
    if hw < 128:
        return hw
    best = 0
    t = 128
    while t <= min(target, hw):
        if hw % t == 0:
            best = t
        t += 128
    if best:
        return best
    return min(target, -(-hw // 128) * 128)


@functools.partial(jax.jit, static_argnames=("tile_n",))
def mlp_pallas(x_nchw, w1, b1, w2, b2, *, tile_n=None):
    """x_nchw: (B, C, H, W).  Weights in PyTorch-native layout:
       w1: (C//2, C), b1: (C//2,), w2: (C, C//2), b2: (C,)."""
    b, c, h, w = x_nchw.shape
    hid = w1.shape[0]
    hw = h * w

    tn = _choose_tile_n(hw) if tile_n is None else tile_n
    grid = (b, pl.cdiv(hw, tn))

    # NCHW -> (B, C, H*W): pure view, no data movement.
    x3 = x_nchw.reshape(b, c, hw)

    dsize = jnp.dtype(x_nchw.dtype).itemsize
    wsize = jnp.dtype(w1.dtype).itemsize
    cost = pl.CostEstimate(
        flops=4 * b * hw * c * hid,                 # two matmuls
        transcendentals=0,
        bytes_accessed=2 * b * c * hw * dsize + (2 * c * hid + hid + c) * wsize,
    )

    out = pl.pallas_call(
        _mlp_kernel,
        out_shape=jax.ShapeDtypeStruct((b, c, hw), x_nchw.dtype),
        grid_spec=pltpu.PrefetchScalarGridSpec(
            num_scalar_prefetch=0,
            grid=grid,
            in_specs=[
                pl.BlockSpec((None, c, tn), lambda bi, j: (bi, 0, j)),  # x tile
                pl.BlockSpec((hid, c), lambda bi, j: (0, 0)),           # w1 (resident)
                pl.BlockSpec((hid, 1), lambda bi, j: (0, 0)),           # b1
                pl.BlockSpec((c, hid), lambda bi, j: (0, 0)),           # w2
                pl.BlockSpec((c, 1), lambda bi, j: (0, 0)),             # b2
            ],
            out_specs=pl.BlockSpec((None, c, tn), lambda bi, j: (bi, 0, j)),
        ),
        compiler_params=pltpu.CompilerParams(
            dimension_semantics=("parallel", "parallel")),
        cost_estimate=cost,
    )(x3, w1, b1.reshape(hid, 1), w2, b2.reshape(c, 1))

    # (B, C, H*W) -> (B, C, H, W): pure view, no data movement.
    return out.reshape(b, c, h, w)


def init_params(key, channel_size, dtype=jnp.float32):
    """Deterministic PyTorch-style init: U(-1/sqrt(fan_in), 1/sqrt(fan_in)).
    PyTorch-native weight layout: w1: (C//2, C), w2: (C, C//2)."""
    hid = channel_size // 2
    k1, k2, k3, k4 = jax.random.split(key, 4)
    bound1 = 1.0 / jnp.sqrt(channel_size)
    bound2 = 1.0 / jnp.sqrt(hid)
    w1 = jax.random.uniform(k1, (hid, channel_size), dtype, -bound1, bound1)
    b1 = jax.random.uniform(k2, (hid,), dtype, -bound1, bound1)
    w2 = jax.random.uniform(k3, (channel_size, hid), dtype, -bound2, bound2)
    b2 = jax.random.uniform(k4, (channel_size,), dtype, -bound2, bound2)
    return w1, b1, w2, b2


def mlp_reference(x_nchw, w1, b1, w2, b2):
    """Pure-JAX reference replicating the PyTorch forward (tokens-last layout)."""
    b, c, h, w = x_nchw.shape
    t = x_nchw.reshape(b, c, h * w).transpose(0, 2, 1)        # (B, HW, C)
    t = jnp.maximum(t @ w1.T + b1, 0.0)
    t = jnp.maximum(t @ w2.T + b2, 0.0)
    return t.transpose(0, 2, 1).reshape(b, c, h, w)


if __name__ == "__main__":
    B, C, H, W = 2, 32, 16, 16     # channel_size = 32 -> hidden = 16, HW = 256
    key = jax.random.PRNGKey(0)
    kx, kp = jax.random.split(key)

    x = jax.random.normal(kx, (B, C, H, W), jnp.float32)
    w1, b1, w2, b2 = init_params(kp, C)

    out = mlp_pallas(x, w1, b1, w2, b2)
    out = jax.block_until_ready(out)

    ref = mlp_reference(x, w1, b1, w2, b2)
    assert out.shape == (B, C, H, W), out.shape
    assert jnp.allclose(out, ref, atol=1e-5, rtol=1e-5), "mismatch vs reference"

    print("KERNEL_OK")
</pallas_src>

<mosaic_0001>
module attributes {stable_mosaic.version = 11 : i64} {
  func.func @_mlp_kernel(%arg0: i32, %arg1: i32, %arg2: memref<1x32x256xf32, #tpu.memory_space<vmem>>, %arg3: memref<16x32xf32, #tpu.memory_space<vmem>>, %arg4: memref<16x1xf32, #tpu.memory_space<vmem>>, %arg5: memref<32x16xf32, #tpu.memory_space<vmem>>, %arg6: memref<32x1xf32, #tpu.memory_space<vmem>>, %arg7: memref<1x32x256xf32, #tpu.memory_space<vmem>>) attributes {dimension_semantics = [#tpu.dimension_semantics<parallel>, #tpu.dimension_semantics<parallel>], iteration_bounds = array<i64: 2, 1>, scalar_prefetch = 0 : i64, scratch_operands = 0 : i64, tpu.core_type = #tpu.core_type<tc>, window_params = [{transform_indices = @transform_0, window_bounds = array<i64: 1, 32, 256>}, {pipeline_mode = #tpu.pipeline_mode<synchronous>, transform_indices = @transform_1, window_bounds = array<i64: 16, 32>}, {pipeline_mode = #tpu.pipeline_mode<synchronous>, transform_indices = @transform_2, window_bounds = array<i64: 16, 1>}, {pipeline_mode = #tpu.pipeline_mode<synchronous>, transform_indices = @transform_3, window_bounds = array<i64: 32, 16>}, {pipeline_mode = #tpu.pipeline_mode<synchronous>, transform_indices = @transform_4, window_bounds = array<i64: 32, 1>}, {transform_indices = @transform_5, window_bounds = array<i64: 1, 32, 256>}]} {
    %c0 = arith.constant 0 : index
    %c0_0 = arith.constant 0 : index
    %c0_1 = arith.constant 0 : index
    %0 = vector.load %arg2[%c0, %c0_0, %c0_1] : memref<1x32x256xf32, #tpu.memory_space<vmem>>, vector<1x32x256xf32>
    %1 = vector.shape_cast %0 : vector<1x32x256xf32> to vector<32x256xf32>
    %c0_2 = arith.constant 0 : index
    %c0_3 = arith.constant 0 : index
    %2 = vector.load %arg3[%c0_2, %c0_3] : memref<16x32xf32, #tpu.memory_space<vmem>>, vector<16x32xf32>
    %cst = arith.constant dense<0.000000e+00> : vector<16x256xf32>
    %3 = tpu.matmul %2, %1, %cst {dimension_numbers = #tpu.dot_dimension_numbers<[1], [0], [0], [1], [0, 0, 1, 1], [], []>} : vector<16x32xf32>, vector<32x256xf32>, vector<16x256xf32> -> vector<16x256xf32>
    %c0_4 = arith.constant 0 : index
    %c0_5 = arith.constant 0 : index
    %4 = vector.load %arg4[%c0_4, %c0_5] : memref<16x1xf32, #tpu.memory_space<vmem>>, vector<16x1xf32>
    %5 = vector.broadcast %4 : vector<16x1xf32> to vector<16x256xf32>
    %6 = arith.addf %3, %5 : vector<16x256xf32>
    %cst_6 = arith.constant 0.000000e+00 : f32
    %7 = vector.broadcast %cst_6 : f32 to vector<16x256xf32>
    %8 = arith.maximumf %6, %7 : vector<16x256xf32>
    %c0_7 = arith.constant 0 : index
    %c0_8 = arith.constant 0 : index
    %9 = vector.load %arg5[%c0_7, %c0_8] : memref<32x16xf32, #tpu.memory_space<vmem>>, vector<32x16xf32>
    %cst_9 = arith.constant dense<0.000000e+00> : vector<32x256xf32>
    %10 = tpu.matmul %9, %8, %cst_9 {dimension_numbers = #tpu.dot_dimension_numbers<[1], [0], [0], [1], [0, 0, 1, 1], [], []>} : vector<32x16xf32>, vector<16x256xf32>, vector<32x256xf32> -> vector<32x256xf32>
    %c0_10 = arith.constant 0 : index
    %c0_11 = arith.constant 0 : index
    %11 = vector.load %arg6[%c0_10, %c0_11] : memref<32x1xf32, #tpu.memory_space<vmem>>, vector<32x1xf32>
    %12 = vector.broadcast %11 : vector<32x1xf32> to vector<32x256xf32>
    %13 = arith.addf %10, %12 : vector<32x256xf32>
    %cst_12 = arith.constant 0.000000e+00 : f32
    %14 = vector.broadcast %cst_12 : f32 to vector<32x256xf32>
    %15 = arith.maximumf %13, %14 : vector<32x256xf32>
    %c0_13 = arith.constant 0 : index
    %c0_14 = arith.constant 0 : index
    %c0_15 = arith.constant 0 : index
    %16 = vector.load %arg7[%c0_13, %c0_14, %c0_15] : memref<1x32x256xf32, #tpu.memory_space<vmem>>, vector<1x32x256xf32>
    %17 = vector.shape_cast %16 : vector<1x32x256xf32> to vector<32x256xf32>
    %18 = vector.shape_cast %15 : vector<32x256xf32> to vector<1x32x256xf32>
    tpu.vector_store %arg7[%c0_13, %c0_14, %c0_15], %18 {strides = array<i32>} : memref<1x32x256xf32, #tpu.memory_space<vmem>>, vector<1x32x256xf32>,
    return
  }
  func.func @transform_0(%arg0: i32, %arg1: i32) -> (i32, i32, i32) {
    %c0_i32 = arith.constant 0 : i32
    %c0_i32_0 = arith.constant 0 : i32
    return %arg0, %c0_i32, %arg1 : i32, i32, i32
  }
  func.func @transform_1(%arg0: i32, %arg1: i32) -> (i32, i32) {
    %c0_i32 = arith.constant 0 : i32
    %c0_i32_0 = arith.constant 0 : i32
    %c0_i32_1 = arith.constant 0 : i32
    return %c0_i32, %c0_i32_0 : i32, i32
  }
  func.func @transform_2(%arg0: i32, %arg1: i32) -> (i32, i32) {
    %c0_i32 = arith.constant 0 : i32
    %c0_i32_0 = arith.constant 0 : i32
    %c0_i32_1 = arith.constant 0 : i32
    return %c0_i32, %c0_i32_0 : i32, i32
  }
  func.func @transform_3(%arg0: i32, %arg1: i32) -> (i32, i32) {
    %c0_i32 = arith.constant 0 : i32
    %c0_i32_0 = arith.constant 0 : i32
    %c0_i32_1 = arith.constant 0 : i32
    return %c0_i32, %c0_i32_0 : i32, i32
  }
  func.func @transform_4(%arg0: i32, %arg1: i32) -> (i32, i32) {
    %c0_i32 = arith.constant 0 : i32
    %c0_i32_0 = arith.constant 0 : i32
    %c0_i32_1 = arith.constant 0 : i32
    return %c0_i32, %c0_i32_0 : i32, i32
  }
  func.func @transform_5(%arg0: i32, %arg1: i32) -> (i32, i32, i32) {
    %c0_i32 = arith.constant 0 : i32
    %c0_i32_0 = arith.constant 0 : i32
    return %arg0, %c0_i32, %arg1 : i32, i32, i32
  }
}

</mosaic_0001>

<bundles_post_ra>
// kernel: mlp_pallas.1
= control target key start
LH: loop header
LB: loop body
LE: loop exit
PB: predicated region body
PF: predicated region fallthrough
CT: control target
= control target key end

     0   :  { %s722_s18 = smov 0   ;;  %s724_s19 = smov 0   ;;  %s814_s0 = inlined_call_operand.vmem [shape: f32[2,32,256], index: 0, kind: input, shape index: {}]   ;;  %s815_s1 = inlined_call_operand.vmem [shape: f32[16,32], index: 1, kind: input, shape index: {}]   ;;  %s816_s2 = inlined_call_operand.vmem [shape: f32[16,1], index: 2, kind: input, shape index: {}]   ;;  %s817_s3 = inlined_call_operand.vmem [shape: f32[32,16], index: 3, kind: input, shape index: {}]   ;;  %s818_s4 = inlined_call_operand.vmem [shape: f32[32,1], index: 4, kind: input, shape index: {}]   ;;  %s819_s5 = inlined_call_operand.vmem [shape: f32[2,32,256], index: 5, kind: output, shape index: {}]  }
   0x1   :  { %s726_s20 = smov 0  }
   0x2 LB: > { %s27_s21 = sadd.s32 1, %s684_s19  ;;  %p611_p0 = scmp.ge.s32.totalorder %s688_s20, 1  ;;  %s688_s20 = sphi %s726_s20, %s15_s20   ;;  %s684_s19 = sphi %s724_s19, %s821_s19   ;;  %s680_s18 = sphi %s722_s18, %s820_s18  }
   0x3   : > { %p29_p1 = scmp.ge.s32.totalorder %s27_s21, 2  ;;  %p208_p2 = scmp.lt.s32.totalorder %s688_s20, 3 }
   0x5   : > { %s823_s21 = smov (%p29_p1, %s27_s21), 0  ;;  %p209_p3 = pnand %p611_p0, %p208_p2 }
   0x6   : > { %p245_p4 = scmp.lt.s32.totalorder (!%p209_p3), %s680_s18, 1  ;;  %v690_v0 = vmov (!%p209_p3), 0.0   ;;  %v691_v1 = vmov (!%p209_p3), 0   ;;  %v274_v2 = vld [vmem:[%s816_s2] sm:$0xff] (!%p209_p3)  ;;  %v275_v3 = vld [vmem:[%s816_s2 + $0x8] sm:$0xff] (!%p209_p3)  ;;  %v380_v4 = vld [vmem:[%s818_s4 + $0x10] sm:$0xff] (!%p209_p3) }
   0x7   : > { %212 = sbr.rel (%p209_p3) target bundleno = 485 (0x1e5), region = 40  ;;  %357 = vmatprep.mubr.f32.mxu0 (!%p209_p3), %v690_v0  ;;  %664 = vset.pattern.permute.xlu0 (!%p209_p3), %v691_v1  ;;  %v272_v17 = vld [vmem:[%s815_s1] sm:$0xff] (!%p209_p3)  ;;  %vm286_vm0 = vcmask (!%p209_p3), 261120   ;;  %v273_v18 = vld [vmem:[%s815_s1 + $0x8] sm:$0xff] (!%p209_p3)  ;;  %v381_v21 = vld [vmem:[%s818_s4 + $0x18] sm:$0xff] (!%p209_p3)  ;;  %vm402_vm1 = vcmask (!%p209_p3), 130048  }
   0x8   : > { %278 = vperm.xlu0 (!%p209_p3), %664, %v274_v2   ;;  %479 = vmatprep.mubr.f32.mxu1 (!%p209_p3), %v690_v0  ;;  %v378_v19 = vld [vmem:[%s818_s4] sm:$0xff] (!%p209_p3)  ;;  %v379_v20 = vld [vmem:[%s818_s4 + $0x8] sm:$0xff] (!%p209_p3)  ;;  %v376_v40 = vld [vmem:[%s817_s3 + $0x10] sm:$0xff] (!%p209_p3) }
   0x9   : > { %665 = vset.pattern.permute.xlu1 (!%p209_p3), %v691_v1  ;;  %v374_v38 = vld [vmem:[%s817_s3] sm:$0xff] (!%p209_p3)  ;;  %v375_v39 = vld [vmem:[%s817_s3 + $0x8] sm:$0xff] (!%p209_p3)  ;;  %v377_v41 = vld [vmem:[%s817_s3 + $0x18] sm:$0xff] (!%p209_p3) }
   0xa   : > { %384 = vperm.xlu1 (!%p209_p3), %665, %v378_v19  }
   0xc   : > { %283 = vperm.xlu0 (!%p209_p3), %664, %v275_v3  }
   0xe   : > { %s825_s18 = smov (!%p245_p4, %s680_s18), 1  ;;  %389 = vperm.xlu1 %665, %v379_v20  }
   0xf   : > { %s624_s26 = sshll.u32 %s825_s18, 6 }
  0x10   : > { %s252_s29 = scalar_lea.vmem %s814_s0, %s624_s26  ;;  %394 = vperm.xlu0 %664, %v380_v4   ;;  %s795_s7 = scalar_lea.vmem %s819_s5, %s624_s26 }
  0x11   : > { %v265_v5 = vld [vmem:[%s252_s29 + $0x8] sm:$0xff]  ;;  %v267_v6 = vld [vmem:[%s252_s29 + $0x18] sm:$0xff]  ;;  %v264_v7 = vld [vmem:[%s252_s29] sm:$0xff] }
  0x12   : > { %v626_v8 = vpack.c.bf16 %v267_v6, %v265_v5  ;;  %v266_v9 = vld [vmem:[%s252_s29 + $0x10] sm:$0xff]  ;;  %v269_v10 = vld [vmem:[%s252_s29 + $0x28] sm:$0xff]  ;;  %v271_v11 = vld [vmem:[%s252_s29 + $0x38] sm:$0xff]  ;;  %399 = vperm.xlu1 %665, %v381_v21  }
  0x13   : > { %v628_v12 = vpack.c.bf16 %v266_v9, %v264_v7  ;;  %v630_v13 = vpack.c.bf16 %v271_v11, %v269_v10  ;;  %v268_v14 = vld [vmem:[%s252_s29 + $0x20] sm:$0xff]  ;;  %v270_v15 = vld [vmem:[%s252_s29 + $0x30] sm:$0xff] }
  0x14   : > { %627 = vmatprep.subr.bf16.mxu0 %v626_v8  ;;  %v632_v16 = vpack.c.bf16 %v270_v15, %v268_v14 }
  0x15   : > { %629 = vmatpush1.bf16.msra.mxu0 %v628_v12 }
  0x16   : > { %631 = vmatprep.subr.bf16.mxu0 %v630_v13 }
  0x19   : > { %633 = vmatpush1.bf16.msra.mxu0 %v632_v16 }
  0x1c   : > { %616 = vmatmul.mubr.msk.f32.vlgmr.msra.gmra.mrb[0].mxu0 %vm286_vm0, %v272_v17 }
  0x1d   : > { %363 = vmatprep.mubr.f32.mxu0 %v690_v0 }
  0x20   : > { %617 = vmatmul.mubr.msk.f32.gmra.mrb[2].mxu0 %vm286_vm0, %v273_v18 }
  0x87   : > { %v279_v22 = vpop.permute.xlu0 %278 }
  0x89   : > { %v385_v42 = vpop.permute.xlu1 %384 }
  0x8b   : > { %v284_v26 = vpop.permute.xlu0 %283 }
  0x8d   : > { %v390_v48 = vpop.permute.xlu1 %389 }
  0x8f   : > { %v395_v55 = vpop.permute.xlu0 %394 }
  0x91   : > { %v400_v62 = vpop.permute.xlu1 %399 }
  0xef   : > { %v359_v23 = vpop.f32.mrb[0].mxu0 }
  0xf0   : > { %v361_v24 = vpop.f32.mrb[1].mxu0  ;;  %v360_v25 = vadd.f32 %v359_v23, %v279_v22 }
  0xf1   : > { %v362_v27 = vadd.f32 %v361_v24, %v279_v22 }
  0xf2   : > { %v370_v32 = vmax.f32 %v360_v25, 0.0 }
  0xf3   : > { %v365_v28 = vpop.f32.mrb[2].mxu0  ;;  %v371_v34 = vmax.f32 %v362_v27, 0.0 }
  0xf4   : > { %v366_v29 = vadd.f32 %v365_v28, %v284_v26  ;;  %v367_v30 = vpop.f32.mrb[3].mxu0 }
  0xf5   : > { %v368_v31 = vadd.f32 %v367_v30, %v284_v26 }
  0xf6   : > { %v372_v33 = vmax.f32 %v366_v29, 0.0 }
  0xf7   : > { %v373_v35 = vmax.f32 %v368_v31, 0.0 }
  0xf8   : > { %v636_v36 = vpack.c.bf16 %v372_v33, %v370_v32 }
  0xf9   : > { %v634_v37 = vpack.c.bf16 %v373_v35, %v371_v34 }
  0xfb   : > { %635 = vmatprep.subr.bf16.mxu1 %v634_v37 }
  0xfc   : > { %637 = vmatpush1.bf16.msra.mxu1 %v636_v36 }
  0xff   : > { %618 = vmatmul.mubr.msk.f32.vlgmr.msra.gmra.mrb[0].mxu1 %vm402_vm1, %v374_v38 }
 0x100   : > { %485 = vmatprep.mubr.f32.mxu1 %v690_v0 }
 0x103   : > { %619 = vmatmul.mubr.msk.f32.gmra.mrb[2].mxu1 %vm402_vm1, %v375_v39 }
 0x104   : > { %491 = vmatprep.mubr.f32.mxu1 %v690_v0 }
 0x107   : > { %620 = vmatmul.mubr.msk.f32.gmra.mrb[4].mxu1 %vm402_vm1, %v376_v40 }
 0x108   : > { %497 = vmatprep.mubr.f32.mxu1 %v690_v0 }
 0x10b   : > { %621 = vmatmul.mubr.msk.f32.gmra.mrb[6].mxu1 %vm402_vm1, %v377_v41 }
 0x1d2   : > { %v481_v43 = vpop.f32.mrb[0].mxu1 }
 0x1d3   : > { %v482_v44 = vadd.f32 %v481_v43, %v385_v42  ;;  %v483_v45 = vpop.f32.mrb[1].mxu1 }
 0x1d4   : > { %v484_v46 = vadd.f32 %v483_v45, %v385_v42 }
 0x1d5   : > { %v504_v47 = vmax.f32 %v482_v44, 0.0 }
 0x1d6   : > { %v505_v49 = vmax.f32 %v484_v46, 0.0  ;;  %v487_v50 = vpop.f32.mrb[2].mxu1 }
 0x1d7   : > { %512 = vst [vmem:[%s795_s7] sm:$0xff] %v504_v47  ;;  %v488_v51 = vadd.f32 %v487_v50, %v390_v48  ;;  %v489_v52 = vpop.f32.mrb[3].mxu1 }
 0x1d8   : > { %513 = vst [vmem:[%s795_s7 + $0x8] sm:$0xff] %v505_v49  ;;  %v490_v53 = vadd.f32 %v489_v52, %v390_v48 }
 0x1d9   : > { %v506_v54 = vmax.f32 %v488_v51, 0.0 }
 0x1da   : > { %v507_v56 = vmax.f32 %v490_v53, 0.0  ;;  %v493_v57 = vpop.f32.mrb[4].mxu1 }
 0x1db   : > { %514 = vst [vmem:[%s795_s7 + $0x10] sm:$0xff] %v506_v54  ;;  %v494_v58 = vadd.f32 %v493_v57, %v395_v55  ;;  %v495_v59 = vpop.f32.mrb[5].mxu1 }
 0x1dc   : > { %515 = vst [vmem:[%s795_s7 + $0x18] sm:$0xff] %v507_v56  ;;  %v496_v60 = vadd.f32 %v495_v59, %v395_v55 }
 0x1dd   : > { %v508_v61 = vmax.f32 %v494_v58, 0.0 }
 0x1de   : > { %v509_v63 = vmax.f32 %v496_v60, 0.0  ;;  %v499_v0 = vpop.f32.mrb[6].mxu1 }
 0x1df   : > { %516 = vst [vmem:[%s795_s7 + $0x20] sm:$0xff] %v508_v61  ;;  %v500_v1 = vadd.f32 %v499_v0, %v400_v62  ;;  %v501_v2 = vpop.f32.mrb[7].mxu1 }
 0x1e0   : > { %517 = vst [vmem:[%s795_s7 + $0x28] sm:$0xff] %v509_v63  ;;  %v502_v3 = vadd.f32 %v501_v2, %v400_v62 }
 0x1e1   : > { %v510_v4 = vmax.f32 %v500_v1, 0.0 }
 0x1e2   : > { %v511_v5 = vmax.f32 %v502_v3, 0.0 }
 0x1e3   : > { %518 = vst [vmem:[%s795_s7 + $0x30] sm:$0xff] %v510_v4 }
 0x1e4   : > { %519 = vst [vmem:[%s795_s7 + $0x38] sm:$0xff] %v511_v5 }
 0x1e5 PF: > { %s15_s20 = sadd.s32 1, %s688_s20   ;;  %s820_s18 = smov %s684_s19 }
 0x1e6   : > { %p12_p5 = scmp.ge.s32.totalorder %s15_s20, 4   ;;  %s821_s19 = smov %s823_s21 }
 0x1e8   :  { %14 = sbr.rel (!%p12_p5) target bundleno = 2 (0x2), region = 70 }

</bundles_post_ra>
